<compile_context>
chip_gen: v6e
topology: v6e:2x2x1
jax: 0.10.0
libtpu: 0.0.40
codegen_flags: <defaults>
</compile_context>

<pallas_src>
import jax
import jax.numpy as jnp
import numpy as np
from jax.experimental import pallas as pl
from jax.experimental.pallas import tpu as pltpu

_LANES = 128
_DMA_TILE = 8  # rows per grid step in the DMA-gather fallback (one sublane tile)


def _round_up(x, m):
    return (x + m - 1) // m * m


def _vmem_capacity_bytes():
    """Physical VMEM of the current generation; conservative 64 MiB fallback."""
    try:
        return int(pltpu.get_tpu_info().vmem_capacity_bytes)
    except Exception:
        return 64 * 1024 * 1024  # v7x per-TensorCore size (smallest of v5e/v6e/v7x)


def _resident_vmem_bytes(v, e, tb, itemsize):
    """Per-tile VMEM footprint of the resident-table (one-hot matmul) path."""
    table = v * e * itemsize
    iota = 2 * tb * v * 4          # (2*TB, V) int32 iota
    onehot = 2 * tb * v * itemsize  # (2*TB, V) one-hot in table dtype
    gathered = 2 * tb * e * 4       # (2*TB, E) f32 gathered embeddings
    prod = tb * e * 4               # (TB, E) f32 elementwise product
    idx = 2 * (2 * tb * 4)          # two (TB, 1) int32 index blocks, double-buffered
    out = 2 * (8 * tb * 4)          # (8, TB) f32 output block, double-buffered
    return int(table + iota + onehot + gathered + prod + idx + out)


# --------------------------------------------------------------------------
# Path 1: resident-table one-hot gather (small / medium vocab).
# --------------------------------------------------------------------------
def _resident_kernel(center_ref, context_ref, emb_ref, out_ref):
    """One batch tile of SkipGram scores.

    center_ref, context_ref : (TB, 1)  int32, VMEM
    emb_ref                 : (V, E)   float, VMEM (resident, fetched once)
    out_ref                 : (8, TB)  f32,   VMEM (all rows identical; row 0 = scores)
    """
    table = emb_ref[...]                                            # (V, E)
    v = table.shape[0]
    tb = center_ref.shape[0]

    # Fused gather: one (2*TB, V) one-hot, one MXU matmul for both lookups.
    idx = jnp.concatenate([center_ref[...], context_ref[...]], axis=0)      # (2*TB, 1)
    word_ids = jax.lax.broadcasted_iota(jnp.int32, (2 * tb, v), 1)          # (2*TB, V)
    onehot = (word_ids == idx).astype(table.dtype)                          # exact 0/1
    gathered = jnp.dot(onehot, table, preferred_element_type=jnp.float32)   # (2*TB, E)

    prod = gathered[:tb] * gathered[tb:]                                    # (TB, E) f32

    # Row-reduce over E on the MXU; 8 rows of ones keep the LHS a full sublane
    # tile and make the output a dense (8, TB) tile (unmasked vst).
    ones_rows = jnp.ones((8, prod.shape[1]), jnp.float32)
    out_ref[...] = jax.lax.dot_general(
        ones_rows, prod,
        dimension_numbers=(((1,), (1,)), ((), ())),
        preferred_element_type=jnp.float32)                                 # (8, TB)


# --------------------------------------------------------------------------
# Path 2: large-vocab fallback — table stays in HBM, per-row DMA gather.
# --------------------------------------------------------------------------
def _dma_gather_kernel(center_idx, context_idx, table_hbm, out_ref,
                       cbuf, xbuf, sems):
    """One tile of _DMA_TILE pairs.

    center_idx, context_idx : (B_pad,) int32, SMEM (scalar prefetch)
    table_hbm               : (V, E) float, HBM (memory_space=pl.ANY)
    out_ref                 : (_DMA_TILE, 1) f32, VMEM
    cbuf, xbuf              : (_DMA_TILE, E) VMEM scratch
    sems                    : DMA semaphores, shape (2, _DMA_TILE)
    """
    base = pl.program_id(0) * _DMA_TILE

    # Issue all row DMAs (2 * _DMA_TILE outstanding), then wait them all.
    for r in range(_DMA_TILE):
        pltpu.make_async_copy(table_hbm.at[pl.ds(center_idx[base + r], 1)],
                              cbuf.at[pl.ds(r, 1)], sems.at[0, r]).start()
        pltpu.make_async_copy(table_hbm.at[pl.ds(context_idx[base + r], 1)],
                              xbuf.at[pl.ds(r, 1)], sems.at[1, r]).start()
    for r in range(_DMA_TILE):
        pltpu.make_async_copy(table_hbm.at[pl.ds(0, 1)],
                              cbuf.at[pl.ds(r, 1)], sems.at[0, r]).wait()
        pltpu.make_async_copy(table_hbm.at[pl.ds(0, 1)],
                              xbuf.at[pl.ds(r, 1)], sems.at[1, r]).wait()

    prod = cbuf[...].astype(jnp.float32) * xbuf[...].astype(jnp.float32)
    out_ref[...] = jnp.sum(prod, axis=-1, keepdims=True)                    # (_DMA_TILE, 1)


def _skipgram_dma_gather(table, center, context, b):
    v, e = table.shape
    b_pad = _round_up(b, _DMA_TILE)
    center_p = jnp.pad(center, (0, b_pad - b))
    context_p = jnp.pad(context, (0, b_pad - b))

    out = pl.pallas_call(
        _dma_gather_kernel,
        out_shape=jax.ShapeDtypeStruct((b_pad, 1), jnp.float32),
        grid_spec=pltpu.PrefetchScalarGridSpec(
            num_scalar_prefetch=2,
            grid=(b_pad // _DMA_TILE,),
            in_specs=[pl.BlockSpec(memory_space=pl.ANY)],  # table stays in HBM
            out_specs=pl.BlockSpec((_DMA_TILE, 1), lambda t, c, x: (t, 0)),
            scratch_shapes=[
                pltpu.VMEM((_DMA_TILE, e), table.dtype),
                pltpu.VMEM((_DMA_TILE, e), table.dtype),
                pltpu.SemaphoreType.DMA((2, _DMA_TILE)),
            ]),
        compiler_params=pltpu.CompilerParams(
            dimension_semantics=("arbitrary",)),
    )(center_p, context_p, table)
    return out[:b, 0]


# --------------------------------------------------------------------------
# Wrapper
# --------------------------------------------------------------------------
def skipgram_forward(embedding, center, context, *, use_bf16_table=False,
                     force_dma_gather=False, batch_tile=512):
    """embedding: (V, E) float; center/context: int32 indices, shape () or (B,).

    Returns float32 scores of shape (B,), matching the PyTorch forward.
    `use_bf16_table=True` runs the gather at native MXU rate with a bf16 table
    (recommended on v5e); scores still accumulate in f32.
    """
    center = jnp.atleast_1d(jnp.asarray(center, jnp.int32))
    context = jnp.atleast_1d(jnp.asarray(context, jnp.int32))
    v, e = embedding.shape
    b = int(center.shape[0])

    table = embedding.astype(jnp.bfloat16) if use_bf16_table else embedding
    itemsize = jnp.dtype(table.dtype).itemsize

    # PyTorch's nn.Embedding raises on out-of-range indices; we clamp instead.
    center = jnp.clip(center, 0, v - 1)
    context = jnp.clip(context, 0, v - 1)

    # Batch tiling (lane-aligned).
    batch_tile = max(_LANES, _round_up(batch_tile, _LANES))
    tb = min(_round_up(b, _LANES), batch_tile)
    b_pad = _round_up(b, tb)

    # Per-generation feasibility check with real intermediate accounting.
    capacity = _vmem_capacity_bytes()
    needed = _resident_vmem_bytes(v, e, tb, itemsize)
    resident_ok = int(needed * 1.3) <= int(capacity * 0.9)

    if force_dma_gather or not resident_ok:
        # Large vocab: DMA row gather (2*B*E bytes moved, no V-scaling in VMEM).
        return _skipgram_dma_gather(table, center, context, b)

    vmem_limit = int(min(capacity * 0.9, max(32 * 1024 * 1024, needed * 1.5)))

    def pad_col(idx):
        # Pad with index 0 (valid row); padded lanes are sliced off below.
        return jnp.pad(idx, (0, b_pad - b)).reshape(b_pad, 1)

    flops = int(2 * (2 * b_pad * v * e) + b_pad * e + 2 * 8 * b_pad * e)
    bytes_accessed = int(v * e * itemsize + 2 * b_pad * 4 + 8 * b_pad * 4)
    cost = pl.CostEstimate(flops=flops, transcendentals=0,
                           bytes_accessed=bytes_accessed)

    out = pl.pallas_call(
        _resident_kernel,
        out_shape=jax.ShapeDtypeStruct((8, b_pad), jnp.float32),
        grid=(b_pad // tb,),
        in_specs=[
            pl.BlockSpec((tb, 1), lambda i: (i, 0)),     # center indices, per tile
            pl.BlockSpec((tb, 1), lambda i: (i, 0)),     # context indices, per tile
            pl.BlockSpec((v, e), lambda i: (0, 0)),      # table: fetched once, reused
        ],
        out_specs=pl.BlockSpec((8, tb), lambda i: (0, i)),
        compiler_params=pltpu.CompilerParams(
            dimension_semantics=("parallel",),
            vmem_limit_bytes=vmem_limit),
        cost_estimate=cost,
    )(pad_col(center), pad_col(context), table)

    return out[0, :b]


if __name__ == "__main__":
    vocab_size = 64
    embed_size = 128
    batch = 8

    key = jax.random.PRNGKey(0)
    k_emb, k_c, k_x = jax.random.split(key, 3)

    # nn.Embedding default init: N(0, 1).
    embedding = jax.random.normal(k_emb, (vocab_size, embed_size), dtype=jnp.float32)
    center = jax.random.randint(k_c, (batch,), 0, vocab_size, dtype=jnp.int32)
    context = jax.random.randint(k_x, (batch,), 0, vocab_size, dtype=jnp.int32)

    # Pure-JAX reference of the PyTorch forward.
    ref = jnp.sum(embedding[center] * embedding[context], axis=-1)
    ref = jax.block_until_ready(ref)

    # 1) Resident-table f32 path (primary).
    score = jax.block_until_ready(skipgram_forward(embedding, center, context))
    assert score.shape == (batch,)
    np.testing.assert_allclose(np.asarray(score), np.asarray(ref), rtol=1e-5, atol=1e-5)

    # 2) Resident-table bf16 path (exact one-hot gather of a bf16 table).
    score_bf16 = jax.block_until_ready(
        skipgram_forward(embedding, center, context, use_bf16_table=True))
    emb_bf16 = embedding.astype(jnp.bfloat16).astype(jnp.float32)
    ref_bf16 = jnp.sum(emb_bf16[center] * emb_bf16[context], axis=-1)
    np.testing.assert_allclose(np.asarray(score_bf16), np.asarray(ref_bf16),
                               rtol=1e-4, atol=1e-4)

    # 3) Large-vocab DMA-gather fallback (forced on the small table to verify).
    score_dma = jax.block_until_ready(
        skipgram_forward(embedding, center, context, force_dma_gather=True))
    np.testing.assert_allclose(np.asarray(score_dma), np.asarray(ref),
                               rtol=1e-5, atol=1e-5)

    print("KERNEL_OK")
</pallas_src>

<mosaic_0001>
module attributes {stable_mosaic.version = 11 : i64} {
  func.func @_resident_kernel(%arg0: i32, %arg1: memref<128x1xi32, #tpu.memory_space<vmem>>, %arg2: memref<128x1xi32, #tpu.memory_space<vmem>>, %arg3: memref<64x128xf32, #tpu.memory_space<vmem>>, %arg4: memref<8x128xf32, #tpu.memory_space<vmem>>) attributes {dimension_semantics = [#tpu.dimension_semantics<parallel>], iteration_bounds = array<i64: 1>, scalar_prefetch = 0 : i64, scratch_operands = 0 : i64, tpu.core_type = #tpu.core_type<tc>, window_params = [{transform_indices = @transform_0, window_bounds = array<i64: 128, 1>}, {transform_indices = @transform_1, window_bounds = array<i64: 128, 1>}, {pipeline_mode = #tpu.pipeline_mode<synchronous>, transform_indices = @transform_2, window_bounds = array<i64: 64, 128>}, {transform_indices = @transform_3, window_bounds = array<i64: 8, 128>}]} {
    %c0 = arith.constant 0 : index
    %c0_0 = arith.constant 0 : index
    %0 = vector.load %arg3[%c0, %c0_0] : memref<64x128xf32, #tpu.memory_space<vmem>>, vector<64x128xf32>
    %c0_1 = arith.constant 0 : index
    %c0_2 = arith.constant 0 : index
    %1 = vector.load %arg1[%c0_1, %c0_2] : memref<128x1xi32, #tpu.memory_space<vmem>>, vector<128x1xi32>
    %c0_3 = arith.constant 0 : index
    %c0_4 = arith.constant 0 : index
    %2 = vector.load %arg2[%c0_3, %c0_4] : memref<128x1xi32, #tpu.memory_space<vmem>>, vector<128x1xi32>
    %3 = tpu.concatenate %1, %2 in 0 : vector<128x1xi32>, vector<128x1xi32> -> vector<256x1xi32>
    %4 = tpu.iota {dimensions = array<i32: 1>} : vector<256x64xi32>
    %5 = vector.broadcast %3 : vector<256x1xi32> to vector<256x64xi32>
    %6 = arith.cmpi eq, %4, %5 : vector<256x64xi32>
    %7 = arith.extui %6 : vector<256x64xi1> to vector<256x64xi32>
    %8 = arith.sitofp %7 : vector<256x64xi32> to vector<256x64xf32>
    %cst = arith.constant dense<0.000000e+00> : vector<256x128xf32>
    %9 = tpu.matmul %8, %0, %cst {dimension_numbers = #tpu.dot_dimension_numbers<[1], [0], [0], [1], [0, 0, 1, 1], [], []>} : vector<256x64xf32>, vector<64x128xf32>, vector<256x128xf32> -> vector<256x128xf32>
    %10 = vector.extract_strided_slice %9 {offsets = [0, 0], sizes = [128, 128], strides = [1, 1]} : vector<256x128xf32> to vector<128x128xf32>
    %11 = vector.extract_strided_slice %9 {offsets = [128, 0], sizes = [128, 128], strides = [1, 1]} : vector<256x128xf32> to vector<128x128xf32>
    %12 = arith.mulf %10, %11 : vector<128x128xf32>
    %cst_5 = arith.constant 1.000000e+00 : f32
    %13 = vector.broadcast %cst_5 : f32 to vector<8x128xf32>
    %cst_6 = arith.constant dense<0.000000e+00> : vector<8x128xf32>
    %14 = tpu.matmul %13, %12, %cst_6 {dimension_numbers = #tpu.dot_dimension_numbers<[1], [1], [0], [0], [0, 0, 1, 0], [], []>} : vector<8x128xf32>, vector<128x128xf32>, vector<8x128xf32> -> vector<8x128xf32>
    %c0_7 = arith.constant 0 : index
    %c0_8 = arith.constant 0 : index
    %15 = vector.load %arg4[%c0_7, %c0_8] : memref<8x128xf32, #tpu.memory_space<vmem>>, vector<8x128xf32>
    tpu.vector_store %arg4[%c0_7, %c0_8], %14 {strides = array<i32>} : memref<8x128xf32, #tpu.memory_space<vmem>>, vector<8x128xf32>,
    return
  }
  func.func @transform_0(%arg0: i32) -> (i32, i32) {
    %c0_i32 = arith.constant 0 : i32
    %c0_i32_0 = arith.constant 0 : i32
    return %arg0, %c0_i32 : i32, i32
  }
  func.func @transform_1(%arg0: i32) -> (i32, i32) {
    %c0_i32 = arith.constant 0 : i32
    %c0_i32_0 = arith.constant 0 : i32
    return %arg0, %c0_i32 : i32, i32
  }
  func.func @transform_2(%arg0: i32) -> (i32, i32) {
    %c0_i32 = arith.constant 0 : i32
    %c0_i32_0 = arith.constant 0 : i32
    %c0_i32_1 = arith.constant 0 : i32
    return %c0_i32, %c0_i32_0 : i32, i32
  }
  func.func @transform_3(%arg0: i32) -> (i32, i32) {
    %c0_i32 = arith.constant 0 : i32
    %c0_i32_0 = arith.constant 0 : i32
    return %c0_i32, %arg0 : i32, i32
  }
}

</mosaic_0001>

<bundles_post_ra>
// kernel: tpu_custom_call.1
= control target key start
LH: loop header
LB: loop body
LE: loop exit
PB: predicated region body
PF: predicated region fallthrough
CT: control target
= control target key end

     0   :  { %v921_v2 = vmov 0   ;;  %v922_v5 = vmov 0.0   ;;  %s1187_s0 = inlined_call_operand.vmem [shape: s32[128,1], index: 0, kind: input, shape index: {}]   ;;  %s1188_s1 = inlined_call_operand.vmem [shape: s32[128,1], index: 1, kind: input, shape index: {}]   ;;  %s1189_s2 = inlined_call_operand.vmem [shape: f32[64,128], index: 2, kind: input, shape index: {}]   ;;  %s1190_s3 = inlined_call_operand.hbm [shape: f32[8,128], index: 3, kind: output, shape index: {}]  }
   0x1   :  { %v25_v0 = vld [vmem:[%s1187_s0 + $0x10] sm:$0xff]  ;;  %v23_v1 = vld [vmem:[%s1187_s0] sm:$0xff]  ;;  %898 = vset.pattern.permute.xlu1 %v921_v2  ;;  %897 = vset.pattern.permute.xlu0 %v921_v2  ;;  %v26_v3 = vld [vmem:[%s1187_s0 + $0x18] sm:$0xff] }
   0x2   :  { %64 = vperm.xlu1 %898, %v25_v0   ;;  %58 = vperm.xlu0 %897, %v23_v1   ;;  %v24_v4 = vld [vmem:[%s1187_s0 + $0x8] sm:$0xff]  ;;  %v27_v7 = vld [vmem:[%s1187_s0 + $0x20] sm:$0xff]  ;;  %v22_v8 = vld [vmem:[%s1189_s2 + $0x38] sm:$0xff] }
   0x3   :  { %857 = vmatprep.subr.mxu1 %v922_v5  ;;  %v28_v6 = vld [vmem:[%s1187_s0 + $0x28] sm:$0xff]  ;;  %v30_v9 = vld [vmem:[%s1187_s0 + $0x38] sm:$0xff]  ;;  %v29_v10 = vld [vmem:[%s1187_s0 + $0x30] sm:$0xff]  ;;  %793 = vmatprep.subr.mxu0 %v22_v8 }
   0x4   :  { %v21_v11 = vld [vmem:[%s1189_s2 + $0x30] sm:$0xff]  ;;  %794 = vmatpush3.msra.mxu0 %v22_v8  ;;  %v20_v12 = vld [vmem:[%s1189_s2 + $0x28] sm:$0xff] }
   0x5   :  { %795 = vmatprep.subr.mxu0 %v21_v11 }
   0x6   :  { %67 = vperm.xlu1 %898, %v26_v3   ;;  %61 = vperm.xlu0 %897, %v24_v4  }
   0xa   :  { %73 = vperm.xlu1 %898, %v28_v6   ;;  %70 = vperm.xlu0 %897, %v27_v7  }
   0xb   :  { %8 = vsyncpa [#allocation3], 0  ;;  %v32_v13 = vld [vmem:[%s1187_s0 + $0x48] sm:$0xff]  ;;  %v31_v14 = vld [vmem:[%s1187_s0 + $0x40] sm:$0xff]  ;;  %796 = vmatpush3.msra.mxu0 %v21_v11  ;;  %v55_v42 = vlaneseq  ;;  %vm249_vm0 = vcmask 523264  }
   0xc   :  { %797 = vmatprep.subr.mxu0 %v20_v12  ;;  %v19_v15 = vld [vmem:[%s1189_s2 + $0x20] sm:$0xff]  ;;  %v18_v16 = vld [vmem:[%s1189_s2 + $0x18] sm:$0xff]  ;;  %v33_v18 = vld [vmem:[%s1187_s0 + $0x50] sm:$0xff] }
   0xd   :  { %798 = vmatpush3.msra.mxu0 %v20_v12  ;;  %v34_v17 = vld [vmem:[%s1187_s0 + $0x58] sm:$0xff]  ;;  %v17_v19 = vld [vmem:[%s1189_s2 + $0x10] sm:$0xff]  ;;  %v36_v20 = vld [vmem:[%s1187_s0 + $0x68] sm:$0xff]  ;;  %v1067_v43 = vand.u32 127, %v55_v42 }
   0xe   :  { %79 = vperm.xlu1 %898, %v30_v9   ;;  %76 = vperm.xlu0 %897, %v29_v10   ;;  %v35_v21 = vld [vmem:[%s1187_s0 + $0x60] sm:$0xff]  ;;  %v16_v22 = vld [vmem:[%s1189_s2 + $0x8] sm:$0xff]  ;;  %v38_v24 = vld [vmem:[%s1187_s0 + $0x78] sm:$0xff] }
   0xf   :  { %799 = vmatprep.subr.mxu0 %v19_v15  ;;  %v15_v23 = vld [vmem:[%s1189_s2] sm:$0xff]  ;;  %v37_v25 = vld [vmem:[%s1187_s0 + $0x70] sm:$0xff]  ;;  %v40_v26 = vld [vmem:[%s1188_s1 + $0x8] sm:$0xff] }
  0x10   :  { %800 = vmatpush3.msra.mxu0 %v19_v15  ;;  %v39_v27 = vld [vmem:[%s1188_s1] sm:$0xff]  ;;  %v42_v28 = vld [vmem:[%s1188_s1 + $0x18] sm:$0xff]  ;;  %v41_v29 = vld [vmem:[%s1188_s1 + $0x10] sm:$0xff] }
  0x11   :  { %801 = vmatprep.subr.mxu0 %v18_v16  ;;  %v44_v30 = vld [vmem:[%s1188_s1 + $0x28] sm:$0xff]  ;;  %v43_v31 = vld [vmem:[%s1188_s1 + $0x20] sm:$0xff]  ;;  %v46_v32 = vld [vmem:[%s1188_s1 + $0x38] sm:$0xff] }
  0x12   :  { %85 = vperm.xlu1 %898, %v32_v13   ;;  %82 = vperm.xlu0 %897, %v31_v14   ;;  %v45_v33 = vld [vmem:[%s1188_s1 + $0x30] sm:$0xff]  ;;  %v48_v34 = vld [vmem:[%s1188_s1 + $0x48] sm:$0xff]  ;;  %v47_v35 = vld [vmem:[%s1188_s1 + $0x40] sm:$0xff] }
  0x13   :  { %802 = vmatpush3.msra.mxu0 %v18_v16  ;;  %v50_v36 = vld [vmem:[%s1188_s1 + $0x58] sm:$0xff]  ;;  %v49_v37 = vld [vmem:[%s1188_s1 + $0x50] sm:$0xff]  ;;  %v52_v38 = vld [vmem:[%s1188_s1 + $0x68] sm:$0xff] }
  0x14   :  { %803 = vmatprep.subr.mxu0 %v17_v19  ;;  %v51_v39 = vld [vmem:[%s1188_s1 + $0x60] sm:$0xff]  ;;  %v54_v40 = vld [vmem:[%s1188_s1 + $0x78] sm:$0xff]  ;;  %v53_v41 = vld [vmem:[%s1188_s1 + $0x70] sm:$0xff]  ;;  %s925_s1 = smov [#allocation2]  }
  0x15   :  { %804 = vmatpush3.msra.mxu0 %v17_v19  ;;  %s664_s9 = sshll.u32 %s925_s1, 4  ;;  %s665_s9 = int_to_ptr.vmem [resolvable:$true] %s664_s9 }
  0x16   :  { %91 = vperm.xlu1 %898, %v34_v17   ;;  %88 = vperm.xlu0 %897, %v33_v18   ;;  %s899_s2 = scalar_lea.vmem %s665_s9, 128  ;;  %p904_p1 = scmp.lt.s32.totalorder %s665_s9, %s665_s9 }
  0x17   :  { %805 = vmatprep.subr.mxu0 %v16_v22  ;;  %p900_p0 = scmp.ne.s32.totalorder %s665_s9, %s899_s2  ;;  %p905_p2 = scmp.lt.s32.totalorder %s899_s2, %s899_s2 }
  0x18   :  { %806 = vmatpush3.msra.mxu0 %v16_v22 }
  0x19   :  { %807 = vmatprep.subr.mxu0 %v15_v23  ;;  %p906_p3 = por %p905_p2, %p904_p1 }
  0x1a   :  { %97 = vperm.xlu1 %898, %v36_v20   ;;  %94 = vperm.xlu0 %897, %v35_v21  }
  0x1b   :  { %808 = vmatpush3.msra.mxu0 %v15_v23  ;;  %p907_p4 = pnand %p906_p3, %p900_p0 }
  0x1e   :  { %103 = vperm.xlu1 %898, %v38_v24   ;;  %100 = vperm.xlu0 %897, %v37_v25  }
  0x22   :  { %109 = vperm.xlu1 %898, %v40_v26   ;;  %106 = vperm.xlu0 %897, %v39_v27  }
  0x26   :  { %115 = vperm.xlu1 %898, %v42_v28   ;;  %112 = vperm.xlu0 %897, %v41_v29  }
  0x2a   :  { %121 = vperm.xlu1 %898, %v44_v30   ;;  %118 = vperm.xlu0 %897, %v43_v31  }
  0x2e   :  { %127 = vperm.xlu1 %898, %v46_v32   ;;  %124 = vperm.xlu0 %897, %v45_v33  }
  0x32   :  { %133 = vperm.xlu1 %898, %v48_v34   ;;  %130 = vperm.xlu0 %897, %v47_v35  }
  0x36   :  { %139 = vperm.xlu1 %898, %v50_v36   ;;  %136 = vperm.xlu0 %897, %v49_v37  }
  0x3a   :  { %145 = vperm.xlu1 %898, %v52_v38   ;;  %142 = vperm.xlu0 %897, %v51_v39  }
  0x3e   :  { %151 = vperm.xlu1 %898, %v54_v40   ;;  %148 = vperm.xlu0 %897, %v53_v41  }
  0x7d   :  { %v65_v44 = vpop.permute.xlu1 %64  ;;  %v59_v45 = vpop.permute.xlu0 %58 }
  0x7e   :  { %vm153_vm1 = vcmp.eq.s32.totalorder %v1067_v43, %v59_v45  ;;  %vm155_vm2 = vcmp.eq.s32.totalorder %v1067_v43, %v65_v44 }
  0x7f   :  { %v672_v46 = vsel %vm153_vm1, 1.0, %v922_v5  ;;  %v674_v49 = vsel %vm155_vm2, 1.0, %v922_v5 }
  0x80   :  { %809 = vmatprep.mubr.msk.f32.mxu0 %vm249_vm0, %v672_v46 }
  0x81   :  { %v68_v47 = vpop.permute.xlu1 %67  ;;  %v62_v48 = vpop.permute.xlu0 %61 }
  0x82   :  { %vm154_vm3 = vcmp.eq.s32.totalorder %v1067_v43, %v62_v48  ;;  %vm156_vm4 = vcmp.eq.s32.totalorder %v1067_v43, %v68_v47 }
  0x83   :  { %v673_v50 = vsel %vm154_vm3, 1.0, %v922_v5  ;;  %v675_v53 = vsel %vm156_vm4, 1.0, %v922_v5 }
  0x84   :  { %810 = vmatmul.mubr.msk.f32.vlgmr.msra.gmra.mxu0 %vm249_vm0, %v673_v50 }
  0x85   :  { %v74_v51 = vpop.permute.xlu1 %73  ;;  %v71_v52 = vpop.permute.xlu0 %70  ;;  %812 = vmatprep.mubr.msk.f32.mxu0 %vm249_vm0, %v674_v49 }
  0x86   :  { %vm157_vm5 = vcmp.eq.s32.totalorder %v1067_v43, %v71_v52  ;;  %vm158_vm6 = vcmp.eq.s32.totalorder %v1067_v43, %v74_v51 }
  0x87   :  { %v676_v54 = vsel %vm157_vm5, 1.0, %v922_v5  ;;  %v677_v57 = vsel %vm158_vm6, 1.0, %v922_v5 }
  0x88   :  { %813 = vmatmul.mubr.msk.f32.gmra.mxu0 %vm249_vm0, %v675_v53 }
  0x89   :  { %v80_v55 = vpop.permute.xlu1 %79  ;;  %v77_v56 = vpop.permute.xlu0 %76  ;;  %815 = vmatprep.mubr.msk.f32.mxu0 %vm249_vm0, %v676_v54 }
  0x8a   :  { %vm159_vm7 = vcmp.eq.s32.totalorder %v1067_v43, %v77_v56  ;;  %vm160_vm8 = vcmp.eq.s32.totalorder %v1067_v43, %v80_v55 }
  0x8b   :  { %v678_v58 = vsel %vm159_vm7, 1.0, %v922_v5  ;;  %v679_v61 = vsel %vm160_vm8, 1.0, %v922_v5 }
  0x8c   :  { %816 = vmatmul.mubr.msk.f32.gmra.mxu0 %vm249_vm0, %v677_v57 }
  0x8d   :  { %v86_v59 = vpop.permute.xlu1 %85  ;;  %v83_v60 = vpop.permute.xlu0 %82  ;;  %818 = vmatprep.mubr.msk.f32.mxu0 %vm249_vm0, %v678_v58 }
  0x8e   :  { %vm161_vm9 = vcmp.eq.s32.totalorder %v1067_v43, %v83_v60  ;;  %vm162_vm10 = vcmp.eq.s32.totalorder %v1067_v43, %v86_v59 }
  0x8f   :  { %v680_v62 = vsel %vm161_vm9, 1.0, %v922_v5  ;;  %v681_v1 = vsel %vm162_vm10, 1.0, %v922_v5 }
  0x90   :  { %819 = vmatmul.mubr.msk.f32.gmra.mxu0 %vm249_vm0, %v679_v61 }
  0x91   :  { %v92_v63 = vpop.permute.xlu1 %91  ;;  %v89_v0 = vpop.permute.xlu0 %88  ;;  %821 = vmatprep.mubr.msk.f32.mxu0 %vm249_vm0, %v680_v62 }
  0x92   :  { %vm163_vm11 = vcmp.eq.s32.totalorder %v1067_v43, %v89_v0  ;;  %vm164_vm12 = vcmp.eq.s32.totalorder %v1067_v43, %v92_v63 }
  0x93   :  { %v682_v2 = vsel %vm163_vm11, 1.0, %v922_v5  ;;  %v683_v6 = vsel %vm164_vm12, 1.0, %v922_v5 }
  0x94   :  { %822 = vmatmul.mubr.msk.f32.gmra.mxu0 %vm249_vm0, %v681_v1 }
  0x95   :  { %v98_v3 = vpop.permute.xlu1 %97  ;;  %v95_v4 = vpop.permute.xlu0 %94  ;;  %824 = vmatprep.mubr.msk.f32.mxu0 %vm249_vm0, %v682_v2 }
  0x96   :  { %vm165_vm13 = vcmp.eq.s32.totalorder %v1067_v43, %v95_v4  ;;  %vm166_vm14 = vcmp.eq.s32.totalorder %v1067_v43, %v98_v3 }
  0x97   :  { %v684_v7 = vsel %vm165_vm13, 1.0, %v922_v5  ;;  %v685_v10 = vsel %vm166_vm14, 1.0, %v922_v5 }
  0x98   :  { %825 = vmatmul.mubr.msk.f32.gmra.mxu0 %vm249_vm0, %v683_v6 }
  0x99   :  { %v104_v8 = vpop.permute.xlu1 %103  ;;  %v101_v9 = vpop.permute.xlu0 %100  ;;  %827 = vmatprep.mubr.msk.f32.mxu0 %vm249_vm0, %v684_v7 }
  0x9a   :  { %vm167_vm15 = vcmp.eq.s32.totalorder %v1067_v43, %v101_v9  ;;  %vm168_vm1 = vcmp.eq.s32.totalorder %v1067_v43, %v104_v8 }
  0x9b   :  { %v686_v11 = vsel %vm167_vm15, 1.0, %v922_v5  ;;  %v687_v14 = vsel %vm168_vm1, 1.0, %v922_v5 }
  0x9c   :  { %828 = vmatmul.mubr.msk.f32.gmra.mxu0 %vm249_vm0, %v685_v10 }
  0x9d   :  { %v110_v12 = vpop.permute.xlu1 %109  ;;  %v107_v13 = vpop.permute.xlu0 %106  ;;  %830 = vmatprep.mubr.msk.f32.mxu0 %vm249_vm0, %v686_v11 }
  0x9e   :  { %vm169_vm2 = vcmp.eq.s32.totalorder %v1067_v43, %v107_v13  ;;  %vm170_vm3 = vcmp.eq.s32.totalorder %v1067_v43, %v110_v12 }
  0x9f   :  { %v688_v15 = vsel %vm169_vm2, 1.0, %v922_v5  ;;  %v689_v18 = vsel %vm170_vm3, 1.0, %v922_v5  ;;  %vm923_vm3 = vmmov 0  }
  0xa0   :  { %831 = vmatmul.mubr.msk.f32.gmra.mxu0 %vm249_vm0, %v687_v14  ;;  %889 = vmatprep.mubr.msk.f32.mxu1 %vm923_vm3, %v922_v5 }
  0xa1   :  { %v116_v16 = vpop.permute.xlu1 %115  ;;  %v113_v17 = vpop.permute.xlu0 %112  ;;  %833 = vmatprep.mubr.msk.f32.mxu0 %vm249_vm0, %v688_v15 }
  0xa2   :  { %vm171_vm4 = vcmp.eq.s32.totalorder %v1067_v43, %v113_v17  ;;  %vm172_vm5 = vcmp.eq.s32.totalorder %v1067_v43, %v116_v16 }
  0xa3   :  { %v690_v19 = vsel %vm171_vm4, 1.0, %v922_v5  ;;  %v691_v22 = vsel %vm172_vm5, 1.0, %v922_v5 }
  0xa4   :  { %834 = vmatmul.mubr.msk.f32.gmra.mxu0 %vm249_vm0, %v689_v18 }
  0xa5   :  { %v122_v20 = vpop.permute.xlu1 %121  ;;  %v119_v21 = vpop.permute.xlu0 %118  ;;  %836 = vmatprep.mubr.msk.f32.mxu0 %vm249_vm0, %v690_v19 }
  0xa6   :  { %vm173_vm6 = vcmp.eq.s32.totalorder %v1067_v43, %v119_v21  ;;  %vm174_vm7 = vcmp.eq.s32.totalorder %v1067_v43, %v122_v20 }
  0xa7   :  { %v692_v23 = vsel %vm173_vm6, 1.0, %v922_v5  ;;  %v693_v26 = vsel %vm174_vm7, 1.0, %v922_v5 }
  0xa8   :  { %837 = vmatmul.mubr.msk.f32.gmra.mxu0 %vm249_vm0, %v691_v22 }
  0xa9   :  { %v128_v24 = vpop.permute.xlu1 %127  ;;  %v125_v25 = vpop.permute.xlu0 %124  ;;  %839 = vmatprep.mubr.msk.f32.mxu0 %vm249_vm0, %v692_v23 }
  0xaa   :  { %vm175_vm8 = vcmp.eq.s32.totalorder %v1067_v43, %v125_v25  ;;  %vm176_vm9 = vcmp.eq.s32.totalorder %v1067_v43, %v128_v24 }
  0xab   :  { %v694_v27 = vsel %vm175_vm8, 1.0, %v922_v5  ;;  %v695_v30 = vsel %vm176_vm9, 1.0, %v922_v5 }
  0xac   :  { %840 = vmatmul.mubr.msk.f32.gmra.mxu0 %vm249_vm0, %v693_v26 }
  0xad   :  { %v134_v28 = vpop.permute.xlu1 %133  ;;  %v131_v29 = vpop.permute.xlu0 %130  ;;  %842 = vmatprep.mubr.msk.f32.mxu0 %vm249_vm0, %v694_v27 }
  0xae   :  { %vm177_vm10 = vcmp.eq.s32.totalorder %v1067_v43, %v131_v29  ;;  %vm178_vm11 = vcmp.eq.s32.totalorder %v1067_v43, %v134_v28 }
  0xaf   :  { %v696_v31 = vsel %vm177_vm10, 1.0, %v922_v5  ;;  %v697_v34 = vsel %vm178_vm11, 1.0, %v922_v5 }
  0xb0   :  { %843 = vmatmul.mubr.msk.f32.gmra.mxu0 %vm249_vm0, %v695_v30  ;;  %v924_v30 = vmov 1.0  }
  0xb1   :  { %v140_v32 = vpop.permute.xlu1 %139  ;;  %v137_v33 = vpop.permute.xlu0 %136  ;;  %845 = vmatprep.mubr.msk.f32.mxu0 %vm249_vm0, %v696_v31 }
  0xb2   :  { %vm179_vm12 = vcmp.eq.s32.totalorder %v1067_v43, %v137_v33  ;;  %vm180_vm13 = vcmp.eq.s32.totalorder %v1067_v43, %v140_v32 }
  0xb3   :  { %v698_v35 = vsel %vm179_vm12, 1.0, %v922_v5  ;;  %v699_v38 = vsel %vm180_vm13, 1.0, %v922_v5 }
  0xb4   :  { %846 = vmatmul.mubr.msk.f32.gmra.mxu0 %vm249_vm0, %v697_v34 }
  0xb5   :  { %v146_v36 = vpop.permute.xlu1 %145  ;;  %v143_v37 = vpop.permute.xlu0 %142  ;;  %848 = vmatprep.mubr.msk.f32.mxu0 %vm249_vm0, %v698_v35 }
  0xb6   :  { %vm181_vm14 = vcmp.eq.s32.totalorder %v1067_v43, %v143_v37  ;;  %vm182_vm15 = vcmp.eq.s32.totalorder %v1067_v43, %v146_v36 }
  0xb7   :  { %v700_v39 = vsel %vm181_vm14, 1.0, %v922_v5  ;;  %v701_v42 = vsel %vm182_vm15, 1.0, %v922_v5 }
  0xb8   :  { %849 = vmatmul.mubr.msk.f32.gmra.mxu0 %vm249_vm0, %v699_v38 }
  0xb9   :  { %v152_v40 = vpop.permute.xlu1 %151  ;;  %v149_v41 = vpop.permute.xlu0 %148  ;;  %851 = vmatprep.mubr.msk.f32.mxu0 %vm249_vm0, %v700_v39 }
  0xba   :  { %vm183_vm1 = vcmp.eq.s32.totalorder %v1067_v43, %v149_v41  ;;  %vm184_vm2 = vcmp.eq.s32.totalorder %v1067_v43, %v152_v40 }
  0xbb   :  { %v702_v44 = vsel %vm183_vm1, 1.0, %v922_v5  ;;  %v703_v45 = vsel %vm184_vm2, 1.0, %v922_v5 }
  0xbc   :  { %852 = vmatmul.mubr.msk.f32.gmra.mxu0 %vm249_vm0, %v701_v42 }
  0xbd   :  { %854 = vmatprep.mubr.msk.f32.mxu0 %vm249_vm0, %v702_v44 }
  0xc0   :  { %855 = vmatmul.mubr.msk.f32.gmra.mxu0 %vm249_vm0, %v703_v45 }
 0x144   :  { %v811_v46 = vpop.f32.mrf.mxu0 }
 0x146   :  { %v412_v47 = vpop.f32.mrf.mxu0 }
 0x148   :  { %v814_v48 = vpop.f32.mrf.mxu0 }
 0x14a   :  { %v422_v49 = vpop.f32.mrf.mxu0 }
 0x14c   :  { %v817_v50 = vpop.f32.mrf.mxu0 }
 0x14e   :  { %v1166_v51 = vpop.f32.mrf.mxu0 }
 0x150   :  { %v820_v52 = vpop.f32.mrf.mxu0 }
 0x152   :  { %v442_v43 = vpop.f32.mrf.mxu0 }
 0x154   :  { %v823_v53 = vpop.f32.mrf.mxu0 }
 0x156   :  { %v452_v54 = vpop.f32.mrf.mxu0 }
 0x158   :  { %v826_v55 = vpop.f32.mrf.mxu0 }
 0x15a   :  { %v462_v56 = vpop.f32.mrf.mxu0 }
 0x15c   :  { %v829_v57 = vpop.f32.mrf.mxu0 }
 0x15e   :  { %v472_v58 = vpop.f32.mrf.mxu0 }
 0x160   :  { %v832_v59 = vpop.f32.mrf.mxu0 }
 0x162   :  { %v482_v60 = vpop.f32.mrf.mxu0 }
 0x164   :  { %v835_v61 = vpop.f32.mrf.mxu0 }
 0x165   :  { %v572_v62 = vmul.f32 %v835_v61, %v811_v46 }
 0x166   :  { %v492_v63 = vpop.f32.mrf.mxu0 }
 0x167   :  { %v571_v0 = vmul.f32 %v492_v63, %v412_v47 }
 0x168   :  { %v838_v1 = vpop.f32.mrf.mxu0 }
 0x169   :  { %v574_v2 = vmul.f32 %v838_v1, %v814_v48 }
 0x16a   :  { %v502_v3 = vpop.f32.mrf.mxu0 }
 0x16b   :  { %v573_v4 = vmul.f32 %v502_v3, %v422_v49 }
 0x16c   :  { %v841_v6 = vpop.f32.mrf.mxu0 }
 0x16d   :  { %v576_v28 = vmul.f32 %v841_v6, %v817_v50 }
 0x16e   :  { %v512_v7 = vpop.f32.mrf.mxu0 }
 0x16f   :  { %v575_v29 = vmul.f32 %v512_v7, %v1166_v51 }
 0x170   :  { %v844_v8 = vpop.f32.mrf.mxu0 }
 0x171   :  { %v578_v26 = vmul.f32 %v844_v8, %v820_v52 }
 0x172   :  { %v522_v9 = vpop.f32.mrf.mxu0 }
 0x173   :  { %v577_v27 = vmul.f32 %v522_v9, %v442_v43 }
 0x174   :  { %v847_v10 = vpop.f32.mrf.mxu0 }
 0x175   :  { %v580_v24 = vmul.f32 %v847_v10, %v823_v53 }
 0x176   :  { %v532_v11 = vpop.f32.mrf.mxu0 }
 0x177   :  { %v579_v25 = vmul.f32 %v532_v11, %v452_v54 }
 0x178   :  { %v850_v12 = vpop.f32.mrf.mxu0 }
 0x179   :  { %v582_v22 = vmul.f32 %v850_v12, %v826_v55 }
 0x17a   :  { %v542_v13 = vpop.f32.mrf.mxu0 }
 0x17b   :  { %v581_v23 = vmul.f32 %v542_v13, %v462_v56 }
 0x17c   :  { %v853_v14 = vpop.f32.mrf.mxu0 }
 0x17d   :  { %v584_v20 = vmul.f32 %v853_v14, %v829_v57 }
 0x17e   :  { %v552_v15 = vpop.f32.mrf.mxu0 }
 0x17f   :  { %v583_v21 = vmul.f32 %v552_v15, %v472_v58 }
 0x180   :  { %v856_v16 = vpop.f32.mrf.mxu0 }
 0x181   :  { %v586_v17 = vmul.f32 %v856_v16, %v832_v59 }
 0x182   :  { %v562_v18 = vpop.f32.mrf.mxu0 }
 0x183   :  { %858 = vmatpush3.xpose.msra.mxu1 %v586_v17  ;;  %v585_v19 = vmul.f32 %v562_v18, %v482_v60 }
 0x184   :  { %859 = vmatprep.subr.mxu1 %v922_v5 }
 0x187   :  { %860 = vmatpush3.xpose.msra.mxu1 %v585_v19 }
 0x188   :  { %861 = vmatprep.subr.mxu1 %v922_v5 }
 0x18b   :  { %862 = vmatpush3.xpose.msra.mxu1 %v584_v20 }
 0x18c   :  { %863 = vmatprep.subr.mxu1 %v922_v5 }
 0x18f   :  { %864 = vmatpush3.xpose.msra.mxu1 %v583_v21 }
 0x190   :  { %865 = vmatprep.subr.mxu1 %v922_v5 }
 0x193   :  { %866 = vmatpush3.xpose.msra.mxu1 %v582_v22 }
 0x194   :  { %867 = vmatprep.subr.mxu1 %v922_v5 }
 0x197   :  { %868 = vmatpush3.xpose.msra.mxu1 %v581_v23 }
 0x198   :  { %869 = vmatprep.subr.mxu1 %v922_v5 }
 0x19b   :  { %870 = vmatpush3.xpose.msra.mxu1 %v580_v24 }
 0x19c   :  { %871 = vmatprep.subr.mxu1 %v922_v5 }
 0x19f   :  { %872 = vmatpush3.xpose.msra.mxu1 %v579_v25 }
 0x1a0   :  { %873 = vmatprep.subr.mxu1 %v922_v5 }
 0x1a3   :  { %874 = vmatpush3.xpose.msra.mxu1 %v578_v26 }
 0x1a4   :  { %875 = vmatprep.subr.mxu1 %v922_v5 }
 0x1a7   :  { %876 = vmatpush3.xpose.msra.mxu1 %v577_v27 }
 0x1a8   :  { %877 = vmatprep.subr.mxu1 %v922_v5 }
 0x1ab   :  { %878 = vmatpush3.xpose.msra.mxu1 %v576_v28 }
 0x1ac   :  { %879 = vmatprep.subr.mxu1 %v922_v5 }
 0x1af   :  { %880 = vmatpush3.xpose.msra.mxu1 %v575_v29 }
 0x1b0   :  { %881 = vmatprep.subr.mxu1 %v922_v5 }
 0x1b3   :  { %882 = vmatpush3.xpose.msra.mxu1 %v574_v2 }
 0x1b4   :  { %883 = vmatprep.subr.mxu1 %v922_v5 }
 0x1b7   :  { %884 = vmatpush3.xpose.msra.mxu1 %v573_v4 }
 0x1b8   :  { %885 = vmatprep.subr.mxu1 %v922_v5 }
 0x1bb   :  { %886 = vmatpush3.xpose.msra.mxu1 %v572_v62 }
 0x1bc   :  { %887 = vmatprep.subr.mxu1 %v922_v5 }
 0x1bf   :  { %888 = vmatpush3.xpose.msra.mxu1 %v571_v0 }
 0x1c2   :  { %890 = vmatmul.mubr.f32.vlgmr.msra.gmra.mxu1 %v924_v30 }
 0x282   :  { %v653_v31 = vpop.f32.mrf.mxu1 }
 0x283   :  { %657 = vst [vmem:[#allocation2] sm:$0xff] %v653_v31 }
 0x284   :  { %v891_v32 = vpop.f32.mrf.mxu1 }
 0x285   :  { %910 = shalt.err (!%p907_p4)
}
 0x286   :  { %667 = dma.vmem_to_hbm [thread:$0]  %s665_s9, 128, %s1190_s3, [#allocation3]  }
 0x287   :  { %919 = dma.done.wait [#allocation3], 128  }
 0x288   :  { %920 = vsyncadd [#allocation3], 4294967168 }
 0x289   :  { %671 = vsyncpa [#allocation3], 1 }

</bundles_post_ra>
